<compile_context>
chip_gen: v6e
topology: v6e:2x2x1
jax: 0.10.0
libtpu: 0.0.40
codegen_flags: <defaults>
</compile_context>

<pallas_src>
import functools
import math

import jax
import jax.numpy as jnp
from jax.experimental import pallas as pl
from jax.experimental.pallas import tpu as pltpu


def _rb_kernel(x_ref, m_ref, w1_ref, b1_ref, w2_ref, b2_ref, out_ref,
               *, W, slope, cout_p):
    N = x_ref.shape[1]          # lanes in this chunk = imgs_per_chunk * H * W

    masks = m_ref[...]          # (8, N) f32 0/1; rows: left, right, up, down, pad...
    m_left, m_right = masks[0:1], masks[1:2]
    m_up, m_down = masks[2:3], masks[3:4]

    def shift(v, d):
        # out[:, p] = v[:, p + d] (wrap along the lane axis; wrapped lanes are masked)
        return pltpu.roll(v, (-d) % N, axis=1)

    def leaky(v):
        return jnp.where(v > 0, v, slope * v)

    def im2col(src):
        # src: (C, N) -> (9*C, N); slab row index = ky*3C + kx*C + ci.
        ph = jnp.concatenate(
            [shift(src, -1) * m_left,     # kx = 0  (dx = -1)
             src,                         # kx = 1  (dx =  0)
             shift(src, +1) * m_right],   # kx = 2  (dx = +1)
            axis=0)                       # (3*C, N)
        return jnp.concatenate(
            [shift(ph, -W) * m_up,        # ky = 0  (dy = -1)
             ph,                          # ky = 1  (dy =  0)
             shift(ph, +W) * m_down],     # ky = 2  (dy = +1)
            axis=0)                       # (9*C, N)

    x = x_ref[...].astype(jnp.float32)    # (Cin_p, N)

    # conv1 + 1x1 skip fused into one wide-K matmul: top Cout_p rows are the conv1
    # pre-activation, bottom Cout_p rows are the skip path c0.
    # TODO(synk): for C >= 64 stage the im2col slab in VMEM scratch (or loop over ky
    # with an unrolled fori_loop) so the three shifted copies aren't all live in vregs.
    r1 = jnp.dot(w1_ref[...], im2col(x),
                 preferred_element_type=jnp.float32) + b1_ref[...]
    y1 = leaky(r1[:cout_p])
    c0 = r1[cout_p:]

    y2 = leaky(jnp.dot(w2_ref[...], im2col(y1),
                       preferred_element_type=jnp.float32) + b2_ref[...])

    out_ref[...] = (y2 + c0).astype(out_ref.dtype)   # lane-dense (Cout_p, N) store


def _round_up(n, m):
    return (n + m - 1) // m * m


def rb_forward(x_nchw, params, *, slope):
    """RB forward. x_nchw: (B, Cin, H, W); params in PyTorch Conv2d layouts."""
    w1, b1, w2, b2, wc, bc = params
    B, Cin, H, W = x_nchw.shape
    Cout = w1.shape[0]
    HW = H * W
    Cin_p = _round_up(Cin, 8)
    Cout_p = _round_up(Cout, 8)

    # Fold batch into the lane axis. Small batches -> one fat grid step (no loop
    # overhead, widest lanes); big even batches -> 2 parallel chunks for v7x dual-TC.
    num_chunks = 2 if (B >= 8 and B % 2 == 0) else 1
    imgs_per_chunk = B // num_chunks
    lanes = imgs_per_chunk * HW           # lane width of one grid step
    N_total = B * HW

    # NCHW -> channel-major (Cin_p, B*HW); pad channels so sublane blocks are aligned.
    x_cm = jnp.transpose(x_nchw.reshape(B, Cin, HW), (1, 0, 2)).reshape(Cin, N_total)
    x_cm = jnp.pad(x_cm, ((0, Cin_p - Cin), (0, 0)))

    # Host-precomputed boundary masks (f32 0/1), computed from the WITHIN-image
    # position so they also mask cross-image wrap lanes of pltpu.roll.
    pos = jnp.arange(lanes, dtype=jnp.int32) % HW
    col = pos % W
    row = pos // W
    masks = jnp.stack([
        (col != 0).astype(jnp.float32),       # ok_left  (source col x-1 valid)
        (col != W - 1).astype(jnp.float32),   # ok_right (source col x+1 valid)
        (row != 0).astype(jnp.float32),       # ok_up    (source row y-1 valid)
        (row != H - 1).astype(jnp.float32),   # ok_down  (source row y+1 valid)
    ], axis=0)
    masks = jnp.pad(masks, ((0, 8 - masks.shape[0]), (0, 0)))   # (8, lanes)

    def prep3x3(w, b, cout_p, ci_p):
        co, ci = w.shape[0], w.shape[1]
        wp = jnp.pad(w, ((0, cout_p - co), (0, ci_p - ci), (0, 0), (0, 0)))
        # (Cout_p, Ci_p, ky, kx) -> (Cout_p, ky, kx, Ci_p) -> (Cout_p, 9*Ci_p)
        wk = jnp.transpose(wp, (0, 2, 3, 1)).reshape(cout_p, 9 * ci_p)
        bp = jnp.pad(b, (0, cout_p - co)).reshape(cout_p, 1).astype(jnp.float32)
        return wk.astype(jnp.float32), bp

    w1k, b1p = prep3x3(w1, b1, Cout_p, Cin_p)
    w2k, b2p = prep3x3(w2, b2, Cout_p, Cout_p)

    # Fold the 1x1 skip into conv1's weight as extra M rows (center-tap K columns).
    wc_p = jnp.pad(wc, ((0, Cout_p - Cout), (0, Cin_p - Cin))).astype(jnp.float32)
    wc_full = jnp.zeros((Cout_p, 9 * Cin_p), jnp.float32)
    wc_full = wc_full.at[:, 4 * Cin_p:5 * Cin_p].set(wc_p)      # ky=1, kx=1 block
    bc_p = jnp.pad(bc, (0, Cout_p - Cout)).reshape(Cout_p, 1).astype(jnp.float32)
    w1f = jnp.concatenate([w1k, wc_full], axis=0)               # (2*Cout_p, 9*Cin_p)
    b1f = jnp.concatenate([b1p, bc_p], axis=0)                  # (2*Cout_p, 1)

    kernel = functools.partial(_rb_kernel, W=W, slope=slope, cout_p=Cout_p)

    # TODO(synk): for large images add an H-stripe grid axis (1-row halo) and an
    # explicit vmem_limit_bytes so blocks also fit v7x's 64 MiB VMEM.
    out_flat = pl.pallas_call(
        kernel,
        out_shape=jax.ShapeDtypeStruct((Cout_p, N_total), x_nchw.dtype),
        grid_spec=pltpu.PrefetchScalarGridSpec(
            num_scalar_prefetch=0,
            grid=(num_chunks,),
            in_specs=[
                pl.BlockSpec((Cin_p, lanes), lambda b: (0, b)),             # x
                pl.BlockSpec((8, lanes), lambda b: (0, 0)),                 # masks
                pl.BlockSpec((2 * Cout_p, 9 * Cin_p), lambda b: (0, 0)),    # w1 + skip
                pl.BlockSpec((2 * Cout_p, 1), lambda b: (0, 0)),            # b1 + bc
                pl.BlockSpec((Cout_p, 9 * Cout_p), lambda b: (0, 0)),       # w2
                pl.BlockSpec((Cout_p, 1), lambda b: (0, 0)),                # b2
            ],
            out_specs=pl.BlockSpec((Cout_p, lanes), lambda b: (0, b)),
        ),
        compiler_params=pltpu.CompilerParams(
            dimension_semantics=("parallel",)),
    )(x_cm, masks, w1f, b1f, w2k, b2p)

    # (Cout_p, B*HW) -> (B, Cout, H, W)
    out = out_flat.reshape(Cout_p, B, HW).transpose(1, 0, 2)[:, :Cout, :]
    return out.reshape(B, Cout, H, W)


def init_params(key, in_size, out_size):
    # Deterministic synthetic init; shapes match nn.Conv2d of the PyTorch module.
    ks = jax.random.split(key, 6)
    s1 = 1.0 / math.sqrt(in_size * 9)
    s2 = 1.0 / math.sqrt(out_size * 9)
    sc = 1.0 / math.sqrt(in_size)
    w1 = jax.random.uniform(ks[0], (out_size, in_size, 3, 3), jnp.float32, -s1, s1)
    b1 = jax.random.uniform(ks[1], (out_size,), jnp.float32, -s1, s1)
    w2 = jax.random.uniform(ks[2], (out_size, out_size, 3, 3), jnp.float32, -s2, s2)
    b2 = jax.random.uniform(ks[3], (out_size,), jnp.float32, -s2, s2)
    wc = jax.random.uniform(ks[4], (out_size, in_size), jnp.float32, -sc, sc)
    bc = jax.random.uniform(ks[5], (out_size,), jnp.float32, -sc, sc)
    return w1, b1, w2, b2, wc, bc


def rb_reference(x_nchw, params, slope):
    # Pure-JAX reference (XLA convolutions) for correctness checking.
    w1, b1, w2, b2, wc, bc = params
    Cout, Cin = wc.shape
    x = jnp.transpose(x_nchw, (0, 2, 3, 1))  # NHWC

    def conv(inp, w_oihw, b, pad):
        w_hwio = jnp.transpose(w_oihw, (2, 3, 1, 0))
        y = jax.lax.conv_general_dilated(
            inp, w_hwio, window_strides=(1, 1),
            padding=[(pad, pad), (pad, pad)],
            dimension_numbers=("NHWC", "HWIO", "NHWC"))
        return y + b

    def leaky(v):
        return jnp.where(v > 0, v, slope * v)

    y = leaky(conv(x, w1, b1, 1))
    y = leaky(conv(y, w2, b2, 1))
    c0 = conv(x, wc.reshape(Cout, Cin, 1, 1), bc, 0)
    return jnp.transpose(y + c0, (0, 3, 1, 2))


if __name__ == "__main__":
    B, Cin, H, W = 2, 4, 16, 16
    Cout = 8
    relu_slope = 0.2

    key = jax.random.PRNGKey(0)
    kx, kp = jax.random.split(key)
    x = jax.random.normal(kx, (B, Cin, H, W), jnp.float32)
    params = init_params(kp, Cin, Cout)

    out = jax.block_until_ready(rb_forward(x, params, slope=relu_slope))

    ref = rb_reference(x, params, relu_slope)
    assert out.shape == (B, Cout, H, W), out.shape
    if not bool(jnp.allclose(out, ref, atol=1e-4, rtol=1e-4)):
        max_err = float(jnp.max(jnp.abs(out - ref)))
        raise AssertionError(f"Pallas RB kernel mismatch vs reference, max_err={max_err}")
    print("KERNEL_OK")
</pallas_src>

<mosaic_0001>
module attributes {stable_mosaic.version = 11 : i64} {
  func.func @_rb_kernel(%arg0: i32, %arg1: memref<8x512xf32, #tpu.memory_space<vmem>>, %arg2: memref<8x512xf32, #tpu.memory_space<vmem>>, %arg3: memref<16x72xf32, #tpu.memory_space<vmem>>, %arg4: memref<16x1xf32, #tpu.memory_space<vmem>>, %arg5: memref<8x72xf32, #tpu.memory_space<vmem>>, %arg6: memref<8x1xf32, #tpu.memory_space<vmem>>, %arg7: memref<8x512xf32, #tpu.memory_space<vmem>>) attributes {dimension_semantics = [#tpu.dimension_semantics<parallel>], iteration_bounds = array<i64: 1>, scalar_prefetch = 0 : i64, scratch_operands = 0 : i64, tpu.core_type = #tpu.core_type<tc>, window_params = [{transform_indices = @transform_0, window_bounds = array<i64: 8, 512>}, {pipeline_mode = #tpu.pipeline_mode<synchronous>, transform_indices = @transform_1, window_bounds = array<i64: 8, 512>}, {pipeline_mode = #tpu.pipeline_mode<synchronous>, transform_indices = @transform_2, window_bounds = array<i64: 16, 72>}, {pipeline_mode = #tpu.pipeline_mode<synchronous>, transform_indices = @transform_3, window_bounds = array<i64: 16, 1>}, {pipeline_mode = #tpu.pipeline_mode<synchronous>, transform_indices = @transform_4, window_bounds = array<i64: 8, 72>}, {pipeline_mode = #tpu.pipeline_mode<synchronous>, transform_indices = @transform_5, window_bounds = array<i64: 8, 1>}, {transform_indices = @transform_6, window_bounds = array<i64: 8, 512>}]} {
    %c0 = arith.constant 0 : index
    %c0_0 = arith.constant 0 : index
    %0 = vector.load %arg2[%c0, %c0_0] : memref<8x512xf32, #tpu.memory_space<vmem>>, vector<8x512xf32>
    %1 = vector.extract_strided_slice %0 {offsets = [0, 0], sizes = [1, 512], strides = [1, 1]} : vector<8x512xf32> to vector<1x512xf32>
    %2 = vector.extract_strided_slice %0 {offsets = [1, 0], sizes = [1, 512], strides = [1, 1]} : vector<8x512xf32> to vector<1x512xf32>
    %3 = vector.extract_strided_slice %0 {offsets = [2, 0], sizes = [1, 512], strides = [1, 1]} : vector<8x512xf32> to vector<1x512xf32>
    %4 = vector.extract_strided_slice %0 {offsets = [3, 0], sizes = [1, 512], strides = [1, 1]} : vector<8x512xf32> to vector<1x512xf32>
    %c0_1 = arith.constant 0 : index
    %c0_2 = arith.constant 0 : index
    %5 = vector.load %arg1[%c0_1, %c0_2] : memref<8x512xf32, #tpu.memory_space<vmem>>, vector<8x512xf32>
    %c0_3 = arith.constant 0 : index
    %c0_4 = arith.constant 0 : index
    %6 = vector.load %arg3[%c0_3, %c0_4] : memref<16x72xf32, #tpu.memory_space<vmem>>, vector<16x72xf32>
    %c1_i32 = arith.constant 1 : i32
    %7 = tpu.dynamic_rotate %5 by %c1_i32 dim 1 : vector<8x512xf32>, i32 -> vector<8x512xf32>
    %8 = vector.broadcast %1 : vector<1x512xf32> to vector<8x512xf32>
    %9 = arith.mulf %7, %8 : vector<8x512xf32>
    %c511_i32 = arith.constant 511 : i32
    %10 = tpu.dynamic_rotate %5 by %c511_i32 dim 1 : vector<8x512xf32>, i32 -> vector<8x512xf32>
    %11 = vector.broadcast %2 : vector<1x512xf32> to vector<8x512xf32>
    %12 = arith.mulf %10, %11 : vector<8x512xf32>
    %13 = tpu.concatenate %9, %5, %12 in 0 : vector<8x512xf32>, vector<8x512xf32>, vector<8x512xf32> -> vector<24x512xf32>
    %c16_i32 = arith.constant 16 : i32
    %14 = tpu.dynamic_rotate %13 by %c16_i32 dim 1 : vector<24x512xf32>, i32 -> vector<24x512xf32>
    %15 = vector.broadcast %3 : vector<1x512xf32> to vector<24x512xf32>
    %16 = arith.mulf %14, %15 : vector<24x512xf32>
    %c496_i32 = arith.constant 496 : i32
    %17 = tpu.dynamic_rotate %13 by %c496_i32 dim 1 : vector<24x512xf32>, i32 -> vector<24x512xf32>
    %18 = vector.broadcast %4 : vector<1x512xf32> to vector<24x512xf32>
    %19 = arith.mulf %17, %18 : vector<24x512xf32>
    %20 = tpu.concatenate %16, %13, %19 in 0 : vector<24x512xf32>, vector<24x512xf32>, vector<24x512xf32> -> vector<72x512xf32>
    %cst = arith.constant dense<0.000000e+00> : vector<16x512xf32>
    %21 = tpu.matmul %6, %20, %cst {dimension_numbers = #tpu.dot_dimension_numbers<[1], [0], [0], [1], [0, 0, 1, 1], [], []>} : vector<16x72xf32>, vector<72x512xf32>, vector<16x512xf32> -> vector<16x512xf32>
    %c0_5 = arith.constant 0 : index
    %c0_6 = arith.constant 0 : index
    %22 = vector.load %arg4[%c0_5, %c0_6] : memref<16x1xf32, #tpu.memory_space<vmem>>, vector<16x1xf32>
    %23 = vector.broadcast %22 : vector<16x1xf32> to vector<16x512xf32>
    %24 = arith.addf %21, %23 : vector<16x512xf32>
    %25 = vector.extract_strided_slice %24 {offsets = [0, 0], sizes = [8, 512], strides = [1, 1]} : vector<16x512xf32> to vector<8x512xf32>
    %cst_7 = arith.constant 0.000000e+00 : f32
    %26 = vector.broadcast %cst_7 : f32 to vector<8x512xf32>
    %27 = arith.cmpf ogt, %25, %26 : vector<8x512xf32>
    %cst_8 = arith.constant 2.000000e-01 : f32
    %28 = vector.broadcast %cst_8 : f32 to vector<8x512xf32>
    %29 = arith.mulf %28, %25 : vector<8x512xf32>
    %30 = arith.select %27, %25, %29 : vector<8x512xi1>, vector<8x512xf32>
    %31 = vector.extract_strided_slice %24 {offsets = [8, 0], sizes = [8, 512], strides = [1, 1]} : vector<16x512xf32> to vector<8x512xf32>
    %c0_9 = arith.constant 0 : index
    %c0_10 = arith.constant 0 : index
    %32 = vector.load %arg5[%c0_9, %c0_10] : memref<8x72xf32, #tpu.memory_space<vmem>>, vector<8x72xf32>
    %c1_i32_11 = arith.constant 1 : i32
    %33 = tpu.dynamic_rotate %30 by %c1_i32_11 dim 1 : vector<8x512xf32>, i32 -> vector<8x512xf32>
    %34 = vector.broadcast %1 : vector<1x512xf32> to vector<8x512xf32>
    %35 = arith.mulf %33, %34 : vector<8x512xf32>
    %c511_i32_12 = arith.constant 511 : i32
    %36 = tpu.dynamic_rotate %30 by %c511_i32_12 dim 1 : vector<8x512xf32>, i32 -> vector<8x512xf32>
    %37 = vector.broadcast %2 : vector<1x512xf32> to vector<8x512xf32>
    %38 = arith.mulf %36, %37 : vector<8x512xf32>
    %39 = tpu.concatenate %35, %30, %38 in 0 : vector<8x512xf32>, vector<8x512xf32>, vector<8x512xf32> -> vector<24x512xf32>
    %c16_i32_13 = arith.constant 16 : i32
    %40 = tpu.dynamic_rotate %39 by %c16_i32_13 dim 1 : vector<24x512xf32>, i32 -> vector<24x512xf32>
    %41 = vector.broadcast %3 : vector<1x512xf32> to vector<24x512xf32>
    %42 = arith.mulf %40, %41 : vector<24x512xf32>
    %c496_i32_14 = arith.constant 496 : i32
    %43 = tpu.dynamic_rotate %39 by %c496_i32_14 dim 1 : vector<24x512xf32>, i32 -> vector<24x512xf32>
    %44 = vector.broadcast %4 : vector<1x512xf32> to vector<24x512xf32>
    %45 = arith.mulf %43, %44 : vector<24x512xf32>
    %46 = tpu.concatenate %42, %39, %45 in 0 : vector<24x512xf32>, vector<24x512xf32>, vector<24x512xf32> -> vector<72x512xf32>
    %cst_15 = arith.constant dense<0.000000e+00> : vector<8x512xf32>
    %47 = tpu.matmul %32, %46, %cst_15 {dimension_numbers = #tpu.dot_dimension_numbers<[1], [0], [0], [1], [0, 0, 1, 1], [], []>} : vector<8x72xf32>, vector<72x512xf32>, vector<8x512xf32> -> vector<8x512xf32>
    %c0_16 = arith.constant 0 : index
    %c0_17 = arith.constant 0 : index
    %48 = vector.load %arg6[%c0_16, %c0_17] : memref<8x1xf32, #tpu.memory_space<vmem>>, vector<8x1xf32>
    %49 = vector.broadcast %48 : vector<8x1xf32> to vector<8x512xf32>
    %50 = arith.addf %47, %49 : vector<8x512xf32>
    %cst_18 = arith.constant 0.000000e+00 : f32
    %51 = vector.broadcast %cst_18 : f32 to vector<8x512xf32>
    %52 = arith.cmpf ogt, %50, %51 : vector<8x512xf32>
    %cst_19 = arith.constant 2.000000e-01 : f32
    %53 = vector.broadcast %cst_19 : f32 to vector<8x512xf32>
    %54 = arith.mulf %53, %50 : vector<8x512xf32>
    %55 = arith.select %52, %50, %54 : vector<8x512xi1>, vector<8x512xf32>
    %56 = arith.addf %55, %31 : vector<8x512xf32>
    %c0_20 = arith.constant 0 : index
    %c0_21 = arith.constant 0 : index
    %57 = vector.load %arg7[%c0_20, %c0_21] : memref<8x512xf32, #tpu.memory_space<vmem>>, vector<8x512xf32>
    tpu.vector_store %arg7[%c0_20, %c0_21], %56 {strides = array<i32>} : memref<8x512xf32, #tpu.memory_space<vmem>>, vector<8x512xf32>,
    return
  }
  func.func @transform_0(%arg0: i32) -> (i32, i32) {
    %c0_i32 = arith.constant 0 : i32
    %c0_i32_0 = arith.constant 0 : i32
    return %c0_i32, %arg0 : i32, i32
  }
  func.func @transform_1(%arg0: i32) -> (i32, i32) {
    %c0_i32 = arith.constant 0 : i32
    %c0_i32_0 = arith.constant 0 : i32
    %c0_i32_1 = arith.constant 0 : i32
    return %c0_i32, %c0_i32_0 : i32, i32
  }
  func.func @transform_2(%arg0: i32) -> (i32, i32) {
    %c0_i32 = arith.constant 0 : i32
    %c0_i32_0 = arith.constant 0 : i32
    %c0_i32_1 = arith.constant 0 : i32
    return %c0_i32, %c0_i32_0 : i32, i32
  }
  func.func @transform_3(%arg0: i32) -> (i32, i32) {
    %c0_i32 = arith.constant 0 : i32
    %c0_i32_0 = arith.constant 0 : i32
    %c0_i32_1 = arith.constant 0 : i32
    return %c0_i32, %c0_i32_0 : i32, i32
  }
  func.func @transform_4(%arg0: i32) -> (i32, i32) {
    %c0_i32 = arith.constant 0 : i32
    %c0_i32_0 = arith.constant 0 : i32
    %c0_i32_1 = arith.constant 0 : i32
    return %c0_i32, %c0_i32_0 : i32, i32
  }
  func.func @transform_5(%arg0: i32) -> (i32, i32) {
    %c0_i32 = arith.constant 0 : i32
    %c0_i32_0 = arith.constant 0 : i32
    %c0_i32_1 = arith.constant 0 : i32
    return %c0_i32, %c0_i32_0 : i32, i32
  }
  func.func @transform_6(%arg0: i32) -> (i32, i32) {
    %c0_i32 = arith.constant 0 : i32
    %c0_i32_0 = arith.constant 0 : i32
    return %c0_i32, %arg0 : i32, i32
  }
}

</mosaic_0001>

<bundles_post_ra>
// kernel: tpu_custom_call.1
= control target key start
LH: loop header
LB: loop body
LE: loop exit
PB: predicated region body
PF: predicated region fallthrough
CT: control target
= control target key end

     0   :  { %11 = vsyncpa [#allocation3], 0  ;;  %s1367_s0 = inlined_call_operand.hbm [shape: f32[8,512], index: 0, kind: input, shape index: {}]   ;;  %s1368_s1 = inlined_call_operand.hbm [shape: f32[8,512], index: 1, kind: input, shape index: {}]   ;;  %s1369_s2 = inlined_call_operand.vmem [shape: f32[16,72], index: 2, kind: input, shape index: {}]   ;;  %s1370_s3 = inlined_call_operand.vmem [shape: f32[16,1], index: 3, kind: input, shape index: {}]   ;;  %s1371_s4 = inlined_call_operand.vmem [shape: f32[8,72], index: 4, kind: input, shape index: {}]   ;;  %s1372_s5 = inlined_call_operand.vmem [shape: f32[8,1], index: 5, kind: input, shape index: {}]   ;;  %s1373_s6 = inlined_call_operand.hbm [shape: f32[8,512], index: 6, kind: output, shape index: {}]  }
   0x1   :  { %12 = vsyncpa [#allocation6], 0 }
   0x2   :  { %13 = vsyncpa [#allocation4], 0  ;;  %s840_s21 = smov [#allocation2]   ;;  %s841_s23 = smov [#allocation5]  }
   0x3   :  { %s20_s22 = sshll.u32 %s840_s21, 4  ;;  %s30_s24 = sshll.u32 %s841_s23, 4  ;;  %s21_s22 = int_to_ptr.vmem [resolvable:$true] %s20_s22  ;;  %s31_s24 = int_to_ptr.vmem [resolvable:$true] %s30_s24 }
   0x4   :  { %s782_s25 = scalar_lea.vmem %s21_s22, 512  ;;  %p787_p1 = scmp.lt.s32.totalorder %s21_s22, %s21_s22 }
   0x5   :  { %p783_p0 = scmp.ne.s32.totalorder %s21_s22, %s782_s25  ;;  %p788_p2 = scmp.lt.s32.totalorder %s782_s25, %s782_s25 }
   0x7   :  { %p789_p3 = por %p788_p2, %p787_p1 }
   0x9   :  { %p790_p4 = pnand %p789_p3, %p783_p0 }
   0xb   :  { %793 = shalt.err (!%p790_p4)
}
   0xc   :  { %23 = dma.hbm_to_vmem [thread:$0]  %s1367_s0, 512, %s21_s22, [#allocation3]  }
   0xd   :  { %s802_s28 = scalar_lea.vmem %s31_s24, 512  ;;  %p807_p6 = scmp.lt.s32.totalorder %s31_s24, %s31_s24 }
   0xe   :  { %p803_p5 = scmp.ne.s32.totalorder %s31_s24, %s802_s28  ;;  %p808_p7 = scmp.lt.s32.totalorder %s802_s28, %s802_s28 }
  0x10   :  { %p809_p8 = por %p808_p7, %p807_p6 }
  0x12   :  { %p810_p9 = pnand %p809_p8, %p803_p5 }
  0x14   :  { %813 = shalt.err (!%p810_p9)
}
  0x15   :  { %33 = dma.hbm_to_vmem [thread:$0]  %s1368_s1, 512, %s31_s24, [#allocation6]  }
  0x16   :  { %834 = dma.done.wait [#allocation3], 512  }
  0x17   :  { %835 = vsyncadd [#allocation3], 4294966784 }
  0x18   :  { %836 = dma.done.wait [#allocation6], 512  }
  0x19   :  { %837 = vsyncadd [#allocation6], 4294966784  ;;  %v66_v0 = vlaneseq  ;;  %v890_v3 = vld [vmem:[#allocation2 + $0x10] sm:$0xff]  ;;  %v892_v4 = vld [vmem:[#allocation2] sm:$0xff]  ;;  %s842_s0 = smov 127   ;;  %s843_s1 = smov 1  }
  0x1a   :  { %97 = vrot.lane.b32.xlu1 %v890_v3, %s842_s0  ;;  %93 = vrot.lane.b32.xlu0 %v892_v4, %s842_s0  ;;  %v898_v6 = vld [vmem:[#allocation5 + $0x10] sm:$0xff]  ;;  %v51_v7 = vld [vmem:[#allocation5 + $0x18] sm:$0xff]  ;;  %v902_v9 = vld [vmem:[#allocation2 + $0x8] sm:$0xff]  ;;  %s844_s7 = smov 112   ;;  %s845_s8 = smov 16   ;;  %v846_v55 = vmov 0.0  }
  0x1b   :  { %v74_v1 = vshrl.u32 %v66_v0, 7  ;;  %v900_v8 = vld [vmem:[#allocation2 + $0x18] sm:$0xff]  ;;  %v48_v14 = vld [vmem:[#allocation5] sm:$0xff]  ;;  %v49_v15 = vld [vmem:[#allocation5 + $0x8] sm:$0xff]  ;;  %v950_v20 = vand.u32 127, %v66_v0  ;;  %339 = vmatprep.mubr.f32.mxu0 %v846_v55  ;;  %416 = vmatprep.mubr.f32.mxu1 %v846_v55  ;;  %v847_v56 = vmov 0  }
  0x1c   :  { %772 = vset.pattern.permute.xlu0 %v847_v56  ;;  %773 = vset.pattern.permute.xlu1 %v847_v56  ;;  %v256_v57 = vld [vmem:[%s1370_s3] sm:$0xff]  ;;  %vm268_vm4 = vcmask 588800  }
  0x1d   :  { %v165_v2 = vsub.s32 2, %v74_v1  ;;  %v230_v5 = vsub.s32 3, %v74_v1  ;;  %v108_v21 = vsub.s32 1, %v74_v1  ;;  %vm101_vm0 = vcmp.lt.s32.totalorder %v950_v20, 127 }
  0x1e   :  { %99 = vrot.lane.b32.xlu1 %v900_v8, %s842_s0  ;;  %95 = vrot.lane.b32.xlu0 %v902_v9, %s842_s0  ;;  %v75_v28 = vsub.s32 0, %v74_v1  ;;  %vm68_vm1 = vcmp.lt.s32.totalorder %v950_v20, 1  ;;  %vm215_vm2 = vcmp.lt.s32.totalorder %v950_v20, 112  ;;  %vm150_vm3 = vcmp.lt.s32.totalorder %v950_v20, 16 }
  0x1f   :  { %v905_v10 = vrot.slane %v898_v6, %v165_v2  ;;  %v907_v11 = vrot.slane %v51_v7, %v165_v2  ;;  %v910_v12 = vrot.slane %v898_v6, %v230_v5  ;;  %v912_v13 = vrot.slane %v51_v7, %v230_v5 }
  0x20   :  { %v914_v16 = vrot.slane %v48_v14, %v165_v2  ;;  %v916_v17 = vrot.slane %v49_v15, %v165_v2  ;;  %v918_v18 = vrot.slane %v48_v14, %v230_v5  ;;  %v920_v19 = vrot.slane %v49_v15, %v230_v5 }
  0x21   :  { %v953_v24 = vrot.slane %v48_v14, %v108_v21  ;;  %v955_v25 = vrot.slane %v49_v15, %v108_v21  ;;  %v963_v31 = vrot.slane %v898_v6, %v108_v21  ;;  %v965_v32 = vrot.slane %v51_v7, %v108_v21 }
  0x22   :  { %60 = vrot.lane.b32.xlu1 %v902_v9, %s843_s1  ;;  %58 = vrot.lane.b32.xlu0 %v892_v4, %s843_s1  ;;  %v977_v39 = vrot.slane %v49_v15, %v75_v28  ;;  %v991_v43 = vrot.slane %v48_v14, %v75_v28  ;;  %v996_v47 = vrot.slane %v51_v7, %v75_v28 }
  0x23   :  { %v1010_v51 = vrot.slane %v898_v6, %v75_v28 }
  0x26   :  { %64 = vrot.lane.b32.xlu1 %v900_v8, %s843_s1  ;;  %62 = vrot.lane.b32.xlu0 %v890_v3, %s843_s1 }
  0x2a   :  { %193 = vrot.lane.b32.xlu0 %v892_v4, %s844_s7  ;;  %199 = vrot.lane.b32.xlu1 %v902_v9, %s844_s7 }
  0x2e   :  { %205 = vrot.lane.b32.xlu0 %v890_v3, %s844_s7  ;;  %211 = vrot.lane.b32.xlu1 %v900_v8, %s844_s7 }
  0x32   :  { %128 = vrot.lane.b32.xlu0 %v892_v4, %s845_s8  ;;  %134 = vrot.lane.b32.xlu1 %v902_v9, %s845_s8 }
  0x36   :  { %140 = vrot.lane.b32.xlu0 %v890_v3, %s845_s8  ;;  %146 = vrot.lane.b32.xlu1 %v900_v8, %s845_s8 }
  0x8c   :  { %v98_v22 = vpop.permute.xlu1 %97  ;;  %v94_v23 = vpop.permute.xlu0 %93 }
  0x90   :  { %v100_v26 = vpop.permute.xlu1 %99  ;;  %v96_v27 = vpop.permute.xlu0 %95 }
  0x91   :  { %v103_v29 = vsel %vm101_vm0, %v96_v27, %v98_v22  ;;  %v104_v30 = vsel %vm101_vm0, %v94_v23, %v96_v27  ;;  %v102_v35 = vsel %vm101_vm0, %v98_v22, %v100_v26  ;;  %v105_v36 = vsel %vm101_vm0, %v100_v26, %v94_v23 }
  0x92   :  { %v968_v33 = vmul.f32 %v953_v24, %v104_v30  ;;  %v971_v34 = vmul.f32 %v955_v25, %v103_v29  ;;  %v986_v41 = vmul.f32 %v963_v31, %v102_v35  ;;  %v989_v42 = vmul.f32 %v965_v32, %v105_v36 }
  0x94   :  { %v61_v37 = vpop.permute.xlu1 %60  ;;  %v59_v38 = vpop.permute.xlu0 %58  ;;  %201 = vrot.lane.b32.xlu1 %v971_v34, %s844_s7  ;;  %195 = vrot.lane.b32.xlu0 %v968_v33, %s844_s7 }
  0x95   :  { %v71_v40 = vsel %vm68_vm1, %v59_v38, %v61_v37 }
  0x96   :  { %v994_v44 = vmul.f32 %v977_v39, %v71_v40 }
  0x98   :  { %v65_v45 = vpop.permute.xlu1 %64  ;;  %v63_v46 = vpop.permute.xlu0 %62  ;;  %213 = vrot.lane.b32.xlu1 %v989_v42, %s844_s7  ;;  %207 = vrot.lane.b32.xlu0 %v986_v41, %s844_s7 }
  0x99   :  { %v72_v48 = vsel %vm68_vm1, %v65_v45, %v59_v38  ;;  %v69_v49 = vsel %vm68_vm1, %v63_v46, %v65_v45  ;;  %v70_v52 = vsel %vm68_vm1, %v61_v37, %v63_v46 }
  0x9a   :  { %v1007_v50 = vmul.f32 %v991_v43, %v72_v48  ;;  %v1015_v53 = vmul.f32 %v996_v47, %v69_v49  ;;  %v1022_v54 = vmul.f32 %v1010_v51, %v70_v52 }
  0x9c   :  { %197 = vrot.lane.b32.xlu1 %v994_v44, %s844_s7  ;;  %191 = vrot.lane.b32.xlu0 %v1007_v50, %s844_s7  ;;  %v200_v58 = vpop.permute.xlu1 %199  ;;  %v194_v59 = vpop.permute.xlu0 %193 }
  0x9d   :  { %v223_v6 = vsel %vm215_vm2, %v194_v59, %v200_v58 }
  0x9e   :  { %v248_v46 = vmul.f32 %v918_v18, %v223_v6 }
  0xa0   :  { %209 = vrot.lane.b32.xlu1 %v1015_v53, %s844_s7  ;;  %203 = vrot.lane.b32.xlu0 %v1022_v54, %s844_s7  ;;  %v212_v60 = vpop.permute.xlu1 %211  ;;  %v206_v61 = vpop.permute.xlu0 %205 }
  0xa1   :  { %v220_v7 = vsel %vm215_vm2, %v200_v58, %v206_v61  ;;  %v226_v22 = vsel %vm215_vm2, %v212_v60, %v194_v59  ;;  %v217_v28 = vsel %vm215_vm2, %v206_v61, %v212_v60 }
  0xa2   :  { %v249_v37 = vmul.f32 %v920_v19, %v220_v7  ;;  %v251_v38 = vmul.f32 %v912_v13, %v226_v22  ;;  %v250_v48 = vmul.f32 %v910_v12, %v217_v28 }
  0xa4   :  { %136 = vrot.lane.b32.xlu1 %v971_v34, %s845_s8  ;;  %130 = vrot.lane.b32.xlu0 %v968_v33, %s845_s8  ;;  %v135_v62 = vpop.permute.xlu1 %134  ;;  %v129_v63 = vpop.permute.xlu0 %128 }
  0xa8   :  { %148 = vrot.lane.b32.xlu1 %v989_v42, %s845_s8  ;;  %142 = vrot.lane.b32.xlu0 %v986_v41, %s845_s8  ;;  %v147_v0 = vpop.permute.xlu1 %146  ;;  %v141_v1 = vpop.permute.xlu0 %140 }
  0xa9   :  { %v152_v22 = vsel %vm150_vm3, %v141_v1, %v147_v0 }
  0xac   :  { %132 = vrot.lane.b32.xlu1 %v994_v44, %s845_s8  ;;  %126 = vrot.lane.b32.xlu0 %v1007_v50, %s845_s8 }
  0xb0   :  { %144 = vrot.lane.b32.xlu1 %v1015_v53, %s845_s8  ;;  %138 = vrot.lane.b32.xlu0 %v1022_v54, %s845_s8 }
  0xb4   :  { %260 = vperm.xlu0 %772, %v256_v57  }
 0x106   :  { %v202_v2 = vpop.permute.xlu1 %201  ;;  %v196_v5 = vpop.permute.xlu0 %195 }
 0x107   :  { %v224_v14 = vsel %vm215_vm2, %v196_v5, %v202_v2 }
 0x108   :  { %v252_v36 = vmul.f32 %v918_v18, %v224_v14 }
 0x10a   :  { %v214_v15 = vpop.permute.xlu1 %213  ;;  %v208_v21 = vpop.permute.xlu0 %207 }
 0x10b   :  { %v218_v23 = vsel %vm215_vm2, %v208_v21, %v214_v15  ;;  %v221_v26 = vsel %vm215_vm2, %v202_v2, %v208_v21  ;;  %v227_v27 = vsel %vm215_vm2, %v214_v15, %v196_v5  ;;  %v158_v15 = vsel %vm150_vm3, %v129_v63, %v135_v62 }
 0x10c   :  { %v253_v29 = vmul.f32 %v920_v19, %v221_v26  ;;  %v255_v30 = vmul.f32 %v912_v13, %v227_v27  ;;  %v254_v35 = vmul.f32 %v910_v12, %v218_v23  ;;  %v155_v21 = vsel %vm150_vm3, %v135_v62, %v141_v1 }
 0x10d   :  { %v161_v23 = vsel %vm150_vm3, %v147_v0, %v129_v63  ;;  %v184_v0 = vmul.f32 %v916_v17, %v158_v15  ;;  %v185_v27 = vmul.f32 %v905_v10, %v155_v21 }
 0x10e   :  { %v198_v40 = vpop.permute.xlu1 %197  ;;  %289 = vmatprep.subr.mxu0 %v253_v29  ;;  %366 = vmatprep.subr.mxu1 %v255_v30  ;;  %v192_v45 = vpop.permute.xlu0 %191  ;;  %v183_v28 = vmul.f32 %v914_v16, %v161_v23 }
 0x10f   :  { %290 = vmatpush1.msra.mxu0 %v252_v36  ;;  %367 = vmatpush1.msra.mxu1 %v254_v35  ;;  %v222_v49 = vsel %vm215_vm2, %v192_v45, %v198_v40 }
 0x110   :  { %291 = vmatprep.subr.mxu0 %v249_v37  ;;  %368 = vmatprep.subr.mxu1 %v251_v38  ;;  %v244_v5 = vmul.f32 %v918_v18, %v222_v49 }
 0x111   :  { %292 = vmatpush1.msra.mxu0 %v248_v46  ;;  %369 = vmatpush1.msra.mxu1 %v250_v48 }
 0x112   :  { %v210_v52 = vpop.permute.xlu1 %209  ;;  %v204_v56 = vpop.permute.xlu0 %203 }
 0x113   :  { %v225_v57 = vsel %vm215_vm2, %v210_v52, %v192_v45  ;;  %v216_v58 = vsel %vm215_vm2, %v204_v56, %v210_v52  ;;  %v219_v59 = vsel %vm215_vm2, %v198_v40, %v204_v56  ;;  %v56_v40 = vld [vmem:[%s1369_s2] sm:$0xff] }
 0x114   :  { %v247_v60 = vmul.f32 %v912_v13, %v225_v57  ;;  %v245_v61 = vmul.f32 %v920_v19, %v219_v59  ;;  %v246_v2 = vmul.f32 %v910_v12, %v216_v58 }
 0x116   :  { %v137_v6 = vpop.permute.xlu1 %136  ;;  %293 = vmatprep.subr.mxu0 %v245_v61  ;;  %370 = vmatprep.subr.mxu1 %v247_v60  ;;  %v131_v7 = vpop.permute.xlu0 %130 }
 0x117   :  { %v159_v14 = vsel %vm150_vm3, %v131_v7, %v137_v6  ;;  %294 = vmatpush1.msra.mxu0 %v244_v5  ;;  %371 = vmatpush1.msra.mxu1 %v246_v2 }
 0x118   :  { %295 = vmatprep.subr.mxu0 %v971_v34  ;;  %372 = vmatprep.subr.mxu1 %v989_v42  ;;  %v188_v34 = vmul.f32 %v916_v17, %v159_v14 }
 0x119   :  { %296 = vmatpush1.msra.mxu0 %v968_v33  ;;  %373 = vmatpush1.msra.mxu1 %v986_v41 }
 0x11a   :  { %v149_v26 = vpop.permute.xlu1 %148  ;;  %297 = vmatprep.subr.mxu0 %v902_v9  ;;  %374 = vmatprep.subr.mxu1 %v900_v8  ;;  %v143_v42 = vpop.permute.xlu0 %142 }
 0x11b   :  { %v162_v62 = vsel %vm150_vm3, %v149_v26, %v131_v7  ;;  %v153_v33 = vsel %vm150_vm3, %v143_v42, %v149_v26  ;;  %v156_v41 = vsel %vm150_vm3, %v137_v6, %v143_v42  ;;  %298 = vmatpush1.msra.mxu0 %v892_v4  ;;  %375 = vmatpush1.msra.mxu1 %v890_v3 }
 0x11c   :  { %v187_v63 = vmul.f32 %v914_v16, %v162_v62  ;;  %v189_v9 = vmul.f32 %v905_v10, %v156_v41  ;;  %v190_v8 = vmul.f32 %v907_v11, %v153_v33  ;;  %299 = vmatprep.subr.mxu0 %v994_v44  ;;  %376 = vmatprep.subr.mxu1 %v1015_v53 }
 0x11d   :  { %300 = vmatpush1.msra.mxu0 %v1007_v50  ;;  %377 = vmatpush1.msra.mxu1 %v1022_v54  ;;  %v186_v4 = vmul.f32 %v907_v11, %v152_v22 }
 0x11e   :  { %v133_v1 = vpop.permute.xlu1 %132  ;;  %301 = vmatprep.subr.mxu0 %v188_v34  ;;  %378 = vmatprep.subr.mxu1 %v190_v8  ;;  %v127_v3 = vpop.permute.xlu0 %126 }
 0x11f   :  { %v157_v44 = vsel %vm150_vm3, %v127_v3, %v133_v1  ;;  %302 = vmatpush1.msra.mxu0 %v187_v63  ;;  %379 = vmatpush1.msra.mxu1 %v189_v9 }
 0x120   :  { %v180_v50 = vmul.f32 %v916_v17, %v157_v44  ;;  %303 = vmatprep.subr.mxu0 %v184_v0  ;;  %380 = vmatprep.subr.mxu1 %v186_v4 }
 0x121   :  { %304 = vmatpush1.msra.mxu0 %v183_v28  ;;  %381 = vmatpush1.msra.mxu1 %v185_v27 }
 0x122   :  { %v145_v53 = vpop.permute.xlu1 %144  ;;  %305 = vmatprep.subr.mxu0 %v180_v50  ;;  %v139_v54 = vpop.permute.xlu0 %138 }
 0x123   :  { %v160_v29 = vsel %vm150_vm3, %v145_v53, %v127_v3  ;;  %v151_v30 = vsel %vm150_vm3, %v139_v54, %v145_v53  ;;  %v154_v35 = vsel %vm150_vm3, %v133_v1, %v139_v54 }
 0x124   :  { %v179_v36 = vmul.f32 %v914_v16, %v160_v29  ;;  %v181_v37 = vmul.f32 %v905_v10, %v154_v35  ;;  %v182_v38 = vmul.f32 %v907_v11, %v151_v30 }
 0x126   :  { %306 = vmatpush1.msra.mxu0 %v179_v36  ;;  %382 = vmatprep.subr.mxu1 %v182_v38 }
 0x127   :  { %757 = vmatmul.mubr.msk.f32.vlgmr.msra.gmra.mxu0 %vm268_vm4, %v56_v40  ;;  %383 = vmatpush1.msra.mxu1 %v181_v37 }
 0x128   :  { %759 = vmatmul.mubr.msk.f32.vlgmr.msra.gmra.mxu1 %vm268_vm4, %v56_v40  ;;  %345 = vmatprep.mubr.f32.mxu0 %v846_v55 }
 0x129   :  { %422 = vmatprep.mubr.f32.mxu1 %v846_v55 }
 0x12f   :  { %v261_v45 = vpop.permute.xlu0 %260 }
 0x1e7   :  { %v341_v46 = vpop.f32.mrf.mxu0 }
 0x1e8   :  { %v342_v48 = vadd.f32 %v341_v46, %v261_v45  ;;  %v418_v49 = vpop.f32.mrf.mxu1 }
 0x1e9   :  { %v419_v52 = vadd.f32 %v418_v49, %v261_v45  ;;  %v343_v56 = vpop.f32.mrf.mxu0 }
 0x1ea   :  { %v344_v57 = vadd.f32 %v343_v56, %v261_v45  ;;  %v420_v58 = vpop.f32.mrf.mxu1  ;;  %vm429_vm5 = vcmp.gt.f32.partialorder %v342_v48, 0.0  ;;  %v433_v59 = vmul.f32 0.2, %v342_v48 }
 0x1eb   :  { %vm431_vm6 = vcmp.gt.f32.partialorder %v419_v52, 0.0  ;;  %v435_v60 = vmul.f32 0.2, %v419_v52  ;;  %v421_v2 = vadd.f32 %v420_v58, %v261_v45 }
 0x1ec   :  { %v434_v61 = vmul.f32 0.2, %v344_v57  ;;  %v1142_v5 = vsel %vm429_vm5, %v342_v48, %v433_v59  ;;  %vm430_vm7 = vcmp.gt.f32.partialorder %v344_v57, 0.0 }
 0x1ed   :  { %v1144_v6 = vsel %vm431_vm6, %v419_v52, %v435_v60  ;;  %458 = vrot.lane.b32.xlu1 %v1142_v5, %s842_s0  ;;  %v436_v14 = vmul.f32 0.2, %v421_v2  ;;  %vm432_vm8 = vcmp.gt.f32.partialorder %v421_v2, 0.0 }
 0x1ee   :  { %462 = vrot.lane.b32.xlu0 %v1144_v6, %s842_s0  ;;  %v1150_v7 = vsel %vm430_vm7, %v344_v57, %v434_v61 }
 0x1ef   :  { %v1156_v15 = vsel %vm432_vm8, %v421_v2, %v436_v14 }
 0x1f1   :  { %460 = vrot.lane.b32.xlu1 %v1150_v7, %s842_s0 }
 0x1f2   :  { %442 = vrot.lane.b32.xlu0 %v1142_v5, %s843_s1 }
 0x1f5   :  { %464 = vrot.lane.b32.xlu1 %v1156_v15, %s842_s0 }
 0x1f6   :  { %446 = vrot.lane.b32.xlu0 %v1144_v6, %s843_s1 }
 0x1f9   :  { %444 = vrot.lane.b32.xlu1 %v1150_v7, %s843_s1 }
 0x1fa   :  { %524 = vrot.lane.b32.xlu0 %v1142_v5, %s844_s7 }
 0x1fd   :  { %448 = vrot.lane.b32.xlu1 %v1156_v15, %s843_s1 }
 0x1fe   :  { %536 = vrot.lane.b32.xlu0 %v1144_v6, %s844_s7 }
 0x201   :  { %530 = vrot.lane.b32.xlu1 %v1150_v7, %s844_s7 }
 0x202   :  { %476 = vrot.lane.b32.xlu0 %v1142_v5, %s845_s8 }
 0x205   :  { %542 = vrot.lane.b32.xlu1 %v1156_v15, %s844_s7 }
 0x206   :  { %488 = vrot.lane.b32.xlu0 %v1144_v6, %s845_s8 }
 0x209   :  { %482 = vrot.lane.b32.xlu1 %v1150_v7, %s845_s8 }
 0x20d   :  { %494 = vrot.lane.b32.xlu1 %v1156_v15, %s845_s8 }
 0x25f   :  { %v459_v21 = vpop.permute.xlu1 %458 }
 0x260   :  { %v463_v22 = vpop.permute.xlu0 %462 }
 0x263   :  { %v461_v23 = vpop.permute.xlu1 %460 }
 0x264   :  { %v467_v34 = vsel %vm101_vm0, %v461_v23, %v463_v22  ;;  %v468_v26 = vsel %vm101_vm0, %v459_v21, %v461_v23  ;;  %v443_v9 = vpop.permute.xlu0 %442 }
 0x265   :  { %v1187_v42 = vmul.f32 %v468_v26, %v953_v24  ;;  %v1190_v62 = vmul.f32 %v467_v34, %v955_v25 }
 0x267   :  { %526 = vrot.lane.b32.xlu0 %v1187_v42, %s844_s7  ;;  %532 = vrot.lane.b32.xlu1 %v1190_v62, %s844_s7  ;;  %v465_v33 = vpop.permute.xlu1 %464 }
 0x268   :  { %v466_v41 = vsel %vm101_vm0, %v463_v22, %v465_v33  ;;  %v469_v63 = vsel %vm101_vm0, %v465_v33, %v459_v21  ;;  %v447_v1 = vpop.permute.xlu0 %446 }
 0x269   :  { %v1201_v24 = vmul.f32 %v466_v41, %v963_v31  ;;  %v1204_v25 = vmul.f32 %v469_v63, %v965_v32 }
 0x26b   :  { %544 = vrot.lane.b32.xlu1 %v1204_v25, %s844_s7  ;;  %538 = vrot.lane.b32.xlu0 %v1201_v24, %s844_s7  ;;  %v445_v8 = vpop.permute.xlu1 %444 }
 0x26c   :  { %v452_v0 = vsel %vm68_vm1, %v443_v9, %v445_v8 }
 0x26d   :  { %v1213_v4 = vmul.f32 %v452_v0, %v977_v39  ;;  %v451_v39 = vsel %vm68_vm1, %v445_v8, %v447_v1 }
 0x26e   :  { %v1234_v44 = vmul.f32 %v451_v39, %v1010_v51  ;;  %v570_v51 = vld [vmem:[%s1372_s5] sm:$0xff] }
 0x26f   :  { %528 = vrot.lane.b32.xlu1 %v1213_v4, %s844_s7  ;;  %v449_v31 = vpop.permute.xlu1 %448 }
 0x270   :  { %v450_v32 = vsel %vm68_vm1, %v447_v1, %v449_v31  ;;  %v453_v3 = vsel %vm68_vm1, %v449_v31, %v443_v9 }
 0x271   :  { %v1222_v27 = vmul.f32 %v453_v3, %v991_v43  ;;  %v1225_v28 = vmul.f32 %v450_v32, %v996_v47  ;;  %v57_v43 = vld [vmem:[%s1369_s2 + $0x8] sm:$0xff] }
 0x272   :  { %758 = vmatmul.mubr.msk.f32.gmra.mxu0 %vm268_vm4, %v57_v43  ;;  %760 = vmatmul.mubr.msk.f32.gmra.mxu1 %vm268_vm4, %v57_v43  ;;  %v257_v47 = vld [vmem:[%s1370_s3 + $0x8] sm:$0xff] }
 0x273   :  { %522 = vrot.lane.b32.xlu0 %v1222_v27, %s844_s7  ;;  %540 = vrot.lane.b32.xlu1 %v1225_v28, %s844_s7  ;;  %v531_v50 = vpop.permute.xlu1 %530 }
 0x274   :  { %643 = vmatprep.mubr.f32.mxu0 %v846_v55  ;;  %714 = vmatprep.mubr.f32.mxu1 %v846_v55  ;;  %v525_v55 = vpop.permute.xlu0 %524 }
 0x275   :  { %v553_v45 = vsel %vm215_vm2, %v525_v55, %v531_v50 }
 0x276   :  { %v562_v34 = vmul.f32 %v553_v45, %v918_v18 }
 0x277   :  { %534 = vrot.lane.b32.xlu0 %v1234_v44, %s844_s7  ;;  %484 = vrot.lane.b32.xlu1 %v1190_v62, %s845_s8  ;;  %v543_v54 = vpop.permute.xlu1 %542 }
 0x278   :  { %v537_v53 = vpop.permute.xlu0 %536  ;;  %v556_v52 = vsel %vm215_vm2, %v543_v54, %v525_v55 }
 0x279   :  { %v550_v40 = vsel %vm215_vm2, %v531_v50, %v537_v53  ;;  %v547_v59 = vsel %vm215_vm2, %v537_v53, %v543_v54  ;;  %v565_v22 = vmul.f32 %v556_v52, %v912_v13 }
 0x27a   :  { %v563_v21 = vmul.f32 %v550_v40, %v920_v19  ;;  %v564_v26 = vmul.f32 %v547_v59, %v910_v12 }
 0x27b   :  { %478 = vrot.lane.b32.xlu0 %v1187_v42, %s845_s8  ;;  %496 = vrot.lane.b32.xlu1 %v1204_v25, %s845_s8  ;;  %v483_v30 = vpop.permute.xlu1 %482 }
 0x27c   :  { %v1267_v29 = vpop.permute.xlu0 %476 }
 0x27f   :  { %490 = vrot.lane.b32.xlu0 %v1201_v24, %s845_s8  ;;  %480 = vrot.lane.b32.xlu1 %v1213_v4, %s845_s8  ;;  %v1269_v36 = vpop.permute.xlu1 %494 }
 0x280   :  { %v489_v35 = vpop.permute.xlu0 %488 }
 0x283   :  { %474 = vrot.lane.b32.xlu0 %v1222_v27, %s845_s8  ;;  %492 = vrot.lane.b32.xlu1 %v1225_v28, %s845_s8 }
 0x287   :  { %486 = vrot.lane.b32.xlu0 %v1234_v44, %s845_s8  ;;  %265 = vperm.xlu1 %773, %v257_v47  }
 0x28b   :  { %573 = vperm.xlu0 %772, %v570_v51   ;;  %v502_v51 = vsel %vm150_vm3, %v483_v30, %v489_v35 }
 0x2d9   :  { %v527_v37 = vpop.permute.xlu0 %526  ;;  %v533_v38 = vpop.permute.xlu1 %532 }
 0x2da   :  { %v554_v46 = vsel %vm215_vm2, %v527_v37, %v533_v38 }
 0x2db   :  { %v566_v14 = vmul.f32 %v554_v46, %v918_v18 }
 0x2dd   :  { %v539_v48 = vpop.permute.xlu0 %538  ;;  %v545_v49 = vpop.permute.xlu1 %544 }
 0x2de   :  { %v551_v56 = vsel %vm215_vm2, %v533_v38, %v539_v48  ;;  %v548_v57 = vsel %vm215_vm2, %v539_v48, %v545_v49  ;;  %v557_v58 = vsel %vm215_vm2, %v545_v49, %v527_v37  ;;  %v441_v37 = vld [vmem:[%s1371_s4] sm:$0xff]  ;;  %s848_s4 = smov [#allocation7]  }
 0x2df   :  { %v567_v60 = vmul.f32 %v551_v56, %v920_v19  ;;  %v568_v61 = vmul.f32 %v548_v57, %v910_v12  ;;  %v569_v2 = vmul.f32 %v557_v58, %v912_v13  ;;  %s747_s18 = sshll.u32 %s848_s4, 4  ;;  %s748_s18 = int_to_ptr.vmem [resolvable:$true] %s747_s18 }
 0x2e0   :  { %s814_s19 = scalar_lea.vmem %s748_s18, 512  ;;  %p819_p11 = scmp.lt.s32.totalorder %s748_s18, %s748_s18 }
 0x2e1   :  { %593 = vmatprep.subr.mxu0 %v567_v60  ;;  %664 = vmatprep.subr.mxu1 %v569_v2  ;;  %v529_v23 = vpop.permute.xlu1 %528  ;;  %p815_p10 = scmp.ne.s32.totalorder %s748_s18, %s814_s19  ;;  %p820_p12 = scmp.lt.s32.totalorder %s814_s19, %s814_s19 }
 0x2e2   :  { %594 = vmatpush1.msra.mxu0 %v566_v14  ;;  %665 = vmatpush1.msra.mxu1 %v568_v61 }
 0x2e3   :  { %595 = vmatprep.subr.mxu0 %v563_v21  ;;  %666 = vmatprep.subr.mxu1 %v565_v22  ;;  %p821_p13 = por %p820_p12, %p819_p11 }
 0x2e4   :  { %596 = vmatpush1.msra.mxu0 %v562_v34  ;;  %667 = vmatpush1.msra.mxu1 %v564_v26 }
 0x2e5   :  { %v523_v33 = vpop.permute.xlu0 %522  ;;  %v541_v41 = vpop.permute.xlu1 %540  ;;  %p822_p0 = pnand %p821_p13, %p815_p10 }
 0x2e6   :  { %v555_v63 = vsel %vm215_vm2, %v541_v41, %v523_v33  ;;  %v552_v8 = vsel %vm215_vm2, %v523_v33, %v529_v23 }
 0x2e7   :  { %v561_v9 = vmul.f32 %v555_v63, %v912_v13  ;;  %v558_v43 = vmul.f32 %v552_v8, %v918_v18  ;;  %v499_v18 = vsel %vm150_vm3, %v489_v35, %v1269_v36 }
 0x2e9   :  { %v535_v0 = vpop.permute.xlu0 %534  ;;  %668 = vmatprep.subr.mxu1 %v561_v9  ;;  %v485_v1 = vpop.permute.xlu1 %484 }
 0x2ea   :  { %v546_v31 = vsel %vm215_vm2, %v535_v0, %v541_v41  ;;  %v549_v32 = vsel %vm215_vm2, %v529_v23, %v535_v0 }
 0x2eb   :  { %v559_v3 = vmul.f32 %v549_v32, %v920_v19  ;;  %v560_v39 = vmul.f32 %v546_v31, %v910_v12  ;;  %v505_v12 = vsel %vm150_vm3, %v1267_v29, %v483_v30 }
 0x2ec   :  { %v515_v54 = vmul.f32 %v505_v12, %v916_v17 }
 0x2ed   :  { %v479_v47 = vpop.permute.xlu0 %478  ;;  %597 = vmatprep.subr.mxu0 %v559_v3  ;;  %669 = vmatpush1.msra.mxu1 %v560_v39  ;;  %v497_v13 = vpop.permute.xlu1 %496 }
 0x2ee   :  { %598 = vmatpush1.msra.mxu0 %v558_v43  ;;  %670 = vmatprep.subr.mxu1 %v1204_v25  ;;  %v506_v19 = vsel %vm150_vm3, %v479_v47, %v485_v1 }
 0x2ef   :  { %599 = vmatprep.subr.mxu0 %v1190_v62  ;;  %671 = vmatpush1.msra.mxu1 %v1201_v24  ;;  %v509_v62 = vsel %vm150_vm3, %v497_v13, %v479_v47 }
 0x2f0   :  { %600 = vmatpush1.msra.mxu0 %v1187_v42  ;;  %672 = vmatprep.subr.mxu1 %v1156_v15  ;;  %v508_v15 = vsel %vm150_vm3, %v1269_v36, %v1267_v29  ;;  %v518_v53 = vmul.f32 %v509_v62, %v914_v16 }
 0x2f1   :  { %v491_v24 = vpop.permute.xlu0 %490  ;;  %601 = vmatprep.subr.mxu0 %v1150_v7  ;;  %673 = vmatpush1.msra.mxu1 %v1144_v6  ;;  %v481_v25 = vpop.permute.xlu1 %480  ;;  %v519_v7 = vmul.f32 %v506_v19, %v916_v17  ;;  %v514_v35 = vmul.f32 %v508_v15, %v914_v16 }
 0x2f2   :  { %v500_v42 = vsel %vm150_vm3, %v491_v24, %v497_v13  ;;  %v503_v55 = vsel %vm150_vm3, %v485_v1, %v491_v24  ;;  %602 = vmatpush1.msra.mxu0 %v1142_v5  ;;  %674 = vmatprep.subr.mxu1 %v1225_v28  ;;  %v516_v5 = vmul.f32 %v502_v51, %v905_v10 }
 0x2f3   :  { %v520_v6 = vmul.f32 %v503_v55, %v905_v10  ;;  %v521_v50 = vmul.f32 %v500_v42, %v907_v11  ;;  %603 = vmatprep.subr.mxu0 %v1213_v4  ;;  %675 = vmatpush1.msra.mxu1 %v1234_v44  ;;  %v517_v28 = vmul.f32 %v499_v18, %v907_v11 }
 0x2f4   :  { %604 = vmatpush1.msra.mxu0 %v1222_v27 }
 0x2f5   :  { %v475_v29 = vpop.permute.xlu0 %474  ;;  %605 = vmatprep.subr.mxu0 %v519_v7  ;;  %676 = vmatprep.subr.mxu1 %v521_v50  ;;  %v493_v30 = vpop.permute.xlu1 %492 }
 0x2f6   :  { %v504_v4 = vsel %vm150_vm3, %v475_v29, %v481_v25  ;;  %v507_v44 = vsel %vm150_vm3, %v493_v30, %v475_v29  ;;  %606 = vmatpush1.msra.mxu0 %v518_v53  ;;  %677 = vmatpush1.msra.mxu1 %v520_v6 }
 0x2f7   :  { %v511_v27 = vmul.f32 %v504_v4, %v916_v17  ;;  %v510_v36 = vmul.f32 %v507_v44, %v914_v16  ;;  %607 = vmatprep.subr.mxu0 %v515_v54  ;;  %678 = vmatprep.subr.mxu1 %v517_v28 }
 0x2f8   :  { %608 = vmatpush1.msra.mxu0 %v514_v35  ;;  %679 = vmatpush1.msra.mxu1 %v516_v5 }
 0x2f9   :  { %v487_v38 = vpop.permute.xlu0 %486  ;;  %609 = vmatprep.subr.mxu0 %v511_v27 }
 0x2fa   :  { %v498_v40 = vsel %vm150_vm3, %v487_v38, %v493_v30  ;;  %v501_v45 = vsel %vm150_vm3, %v481_v25, %v487_v38  ;;  %610 = vmatpush1.msra.mxu0 %v510_v36 }
 0x2fb   :  { %v512_v17 = vmul.f32 %v501_v45, %v905_v10  ;;  %v513_v16 = vmul.f32 %v498_v40, %v907_v11  ;;  %761 = vmatmul.mubr.msk.f32.vlgmr.msra.gmra.mxu0 %vm268_vm4, %v441_v37 }
 0x2fd   :  { %680 = vmatprep.subr.mxu1 %v513_v16 }
 0x2fe   :  { %681 = vmatpush1.msra.mxu1 %v512_v17 }
 0x2ff   :  { %762 = vmatmul.mubr.msk.f32.vlgmr.msra.gmra.mxu1 %vm268_vm4, %v441_v37 }
 0x302   :  { %v266_v58 = vpop.permute.xlu1 %265 }
 0x306   :  { %v574_v52 = vpop.permute.xlu0 %573 }
 0x332   :  { %v347_v46 = vpop.f32.mrf.mxu0  ;;  %v424_v49 = vpop.f32.mrf.mxu1 }
 0x333   :  { %v348_v61 = vadd.f32 %v347_v46, %v266_v58  ;;  %v425_v63 = vadd.f32 %v424_v49, %v266_v58 }
 0x334   :  { %v349_v48 = vpop.f32.mrf.mxu0  ;;  %v426_v20 = vpop.f32.mrf.mxu1 }
 0x335   :  { %v350_v22 = vadd.f32 %v349_v48, %v266_v58  ;;  %v427_v1 = vadd.f32 %v426_v20, %v266_v58 }
 0x3bb   :  { %v645_v56 = vpop.f32.mrf.mxu0 }
 0x3bc   :  { %v646_v57 = vadd.f32 %v645_v56, %v574_v52 }
 0x3bd   :  { %v647_v59 = vpop.f32.mrf.mxu0 }
 0x3be   :  { %vm721_vm9 = vcmp.gt.f32.partialorder %v646_v57, 0.0  ;;  %v725_v60 = vmul.f32 0.2, %v646_v57  ;;  %v648_v10 = vadd.f32 %v647_v59, %v574_v52 }
 0x3bf   :  { %v716_v11 = vpop.f32.mrf.mxu1 }
 0x3c0   :  { %v729_v2 = vsel %vm721_vm9, %v646_v57, %v725_v60  ;;  %vm722_vm10 = vcmp.gt.f32.partialorder %v648_v10, 0.0  ;;  %v726_v14 = vmul.f32 0.2, %v648_v10  ;;  %v717_v21 = vadd.f32 %v716_v11, %v574_v52 }
 0x3c1   :  { %v733_v23 = vadd.f32 %v729_v2, %v348_v61  ;;  %v718_v34 = vpop.f32.mrf.mxu1 }
 0x3c2   :  { %v730_v26 = vsel %vm722_vm10, %v648_v10, %v726_v14  ;;  %vm723_vm11 = vcmp.gt.f32.partialorder %v717_v21, 0.0  ;;  %v727_v33 = vmul.f32 0.2, %v717_v21  ;;  %v719_v41 = vadd.f32 %v718_v34, %v574_v52 }
 0x3c3   :  { %737 = vst [vmem:[#allocation7] sm:$0xff] %v733_v23  ;;  %v734_v9 = vadd.f32 %v730_v26, %v350_v22 }
 0x3c4   :  { %v731_v8 = vsel %vm723_vm11, %v717_v21, %v727_v33  ;;  %vm724_vm12 = vcmp.gt.f32.partialorder %v719_v41, 0.0  ;;  %v728_v0 = vmul.f32 0.2, %v719_v41 }
 0x3c5   :  { %738 = vst [vmem:[#allocation7 + $0x8] sm:$0xff] %v734_v9  ;;  %v735_v31 = vadd.f32 %v731_v8, %v425_v63 }
 0x3c6   :  { %v732_v32 = vsel %vm724_vm12, %v719_v41, %v728_v0 }
 0x3c7   :  { %739 = vst [vmem:[#allocation7 + $0x10] sm:$0xff] %v735_v31  ;;  %v736_v3 = vadd.f32 %v732_v32, %v427_v1 }
 0x3c9   :  { %740 = vst [vmem:[#allocation7 + $0x18] sm:$0xff] %v736_v3 }
 0x3ca   :  { %825 = shalt.err (!%p822_p0)
}
 0x3cb   :  { %750 = dma.vmem_to_hbm [thread:$0]  %s748_s18, 512, %s1373_s6, [#allocation4]  }
 0x3cc   :  { %838 = dma.done.wait [#allocation4], 512  }
 0x3cd   :  { %839 = vsyncadd [#allocation4], 4294966784 }
 0x3ce   :  { %754 = vsyncpa [#allocation3], 1 }
 0x3cf   :  { %755 = vsyncpa [#allocation6], 1 }
 0x3d0   :  { %756 = vsyncpa [#allocation4], 1 }

</bundles_post_ra>
